<compile_context>
chip_gen: v7x
topology: tpu7x:2x2x1
jax: 0.10.0
libtpu: 0.0.40
codegen_flags: <defaults>
</compile_context>

<pallas_src>
import functools

import jax
import jax.numpy as jnp
from jax import lax
from jax.experimental import pallas as pl
from jax.experimental.pallas import tpu as pltpu

VMEM_SPEC = pl.BlockSpec(memory_space=pltpu.MemorySpace.VMEM)

NEG_SLOPE = 0.2
NEG_INF = -1e30
VALID_THRESH = 0.5 * NEG_INF   # online row max below this => isolated dst row
PAD_CLASSES = 128              # lane-dense classifier output width


def _round_up(x, m):
    return ((x + m - 1) // m) * m


def _fold_lin(lin_vec, heads, dim):
    """[1, H*D] per-head attention vector -> block-diagonal [H*D, H] matrix."""
    lin = lin_vec.reshape(heads, dim)
    eye = jnp.eye(heads, dtype=lin.dtype)
    return (lin[:, :, None] * eye[:, None, :]).reshape(heads * dim, heads)


# ------------------ kernel P: projections + attention alphas ---------------- #

def _prep_kernel(*refs, nts, ets):
    """Per node-type projection and per edge-type attention alphas (all tiny).

    inputs : [x(N,F), proj_wt(F,C), proj_b(1,C)] per node type,
             then [a_srcT(H,C), a_dst(C,H)] per edge type (block-diag folded lin vecs)
    outputs: x_proj(N_nt,C) f32 per node type,
             then [alpha_srcT(H,N_src), alpha_dst(N_dst,H)] f32 per edge type
    """
    n_nt, n_et = len(nts), len(ets)
    n_in = 3 * n_nt + 2 * n_et
    xproj = {}
    for i, nt in enumerate(nts):
        x_ref, w_ref, b_ref = refs[3 * i], refs[3 * i + 1], refs[3 * i + 2]
        xp = jnp.dot(x_ref[...], w_ref[...],
                     preferred_element_type=jnp.float32) + b_ref[...]
        xproj[nt] = xp
        refs[n_in + i][...] = xp
    for j, (src_t, dst_t) in enumerate(ets):
        a_srcT = refs[3 * n_nt + 2 * j][...]          # [H, C]
        a_dst = refs[3 * n_nt + 2 * j + 1][...]       # [C, H]
        alpha_srcT = lax.dot_general(a_srcT, xproj[src_t],
                                     (((1,), (1,)), ((), ())),
                                     preferred_element_type=jnp.float32)  # [H, N_src]
        alpha_dst = jnp.dot(xproj[dst_t], a_dst,
                            preferred_element_type=jnp.float32)           # [N_dst, H]
        refs[n_in + n_nt + 2 * j][...] = alpha_srcT
        refs[n_in + n_nt + 2 * j + 1][...] = alpha_dst


# --------- kernel A: tiled node-level attention with online softmax --------- #

def _attn_kernel(adj_ref, xsrc_ref, asrc_ref, adst_ref, hmask_ref, o_ref,
                 m_ref, l_ref, acc_ref, *, heads, dst_tile):
    """grid = (dst_tile "parallel", edge_type "arbitrary", src_tile "arbitrary").

    adj_ref   [1, TD, TS] int8      xsrc_ref [1, TS, C] bf16
    asrc_ref  [1, H, TS]  f32       adst_ref [1, TD, H] f32
    hmask_ref [H, C] f32            o_ref    [1, TD, C] f32
    scratch: m [H*TD, 1], l [H*TD, 1], acc [H*TD, C] (f32, persist over src axis)
    """
    k = pl.program_id(2)

    @pl.when(k == 0)
    def _():
        m_ref[...] = jnp.full_like(m_ref, -jnp.inf)
        l_ref[...] = jnp.zeros_like(l_ref)
        acc_ref[...] = jnp.zeros_like(acc_ref)

    # additive mask bias, computed ONCE per tile (hoisted out of the head loop)
    bias = jnp.where(adj_ref[0] > 0, 0.0, NEG_INF)        # [TD, TS] f32
    a_dst = adst_ref[0]                                   # [TD, H]
    a_srcT = asrc_ref[0]                                  # [H, TS]

    # stack all heads along sublanes -> one [H*TD, TS] score block
    per_head = []
    for h in range(heads):
        s = a_dst[:, h:h + 1] + a_srcT[h:h + 1, :]        # [TD, TS]
        s = jnp.maximum(s, NEG_SLOPE * s)                 # leaky_relu (single max)
        per_head.append(s + bias)
    s_all = per_head[0] if heads == 1 else jnp.concatenate(per_head, axis=0)

    # online softmax update (one max/exp/sum pass for all heads)
    m_prev = m_ref[...]
    m_new = jnp.maximum(m_prev, jnp.max(s_all, axis=1, keepdims=True))
    corr = jnp.exp(m_prev - m_new)
    p = jnp.exp(s_all - m_new)                            # masked entries underflow to 0
    l_ref[...] = corr * l_ref[...] + jnp.sum(p, axis=1, keepdims=True)
    # dominant MXU matmul in bf16, f32 accumulation
    acc_ref[...] = corr * acc_ref[...] + jnp.dot(
        p.astype(jnp.bfloat16), xsrc_ref[0], preferred_element_type=jnp.float32)
    m_ref[...] = m_new

    @pl.when(k == pl.num_programs(2) - 1)
    def _():
        inv_l = pl.reciprocal(l_ref[...], approx=True)    # EUP slot
        scaled = acc_ref[...] * inv_l                     # [H*TD, C]
        hm = hmask_ref[...]
        out = scaled[0:dst_tile, :] * hm[0:1, :]
        for h in range(1, heads):
            out = out + scaled[h * dst_tile:(h + 1) * dst_tile, :] * hm[h:h + 1, :]
        # isolated dst rows (no incoming edges over ALL src tiles) -> zero
        valid = m_ref[0:dst_tile, :] > VALID_THRESH       # [TD, 1]
        o_ref[0] = jnp.where(valid, jnp.maximum(out, 0.0), 0.0)   # relu + zero-guard


# ----- kernel B: semantic ("group") attention + classifier + log_softmax ----- #

def _semantic_kernel(out_all_ref, rowmask_ref, q_ref, kwt_ref, kb_ref,
                     cwt_ref, cb_ref, o_ref, *, n_et, n_real):
    """out_all [T, N_pad, C]; padded rows masked out of the per-type mean."""
    outs = [out_all_ref[t] for t in range(n_et)]                     # [N_pad, C] each
    stacked = outs[0] if n_et == 1 else jnp.concatenate(outs, axis=0)
    hproj = jnp.tanh(
        jnp.dot(stacked, kwt_ref[...], preferred_element_type=jnp.float32)
        + kb_ref[...])
    rm = rowmask_ref[...]                                            # [N_pad, 1]
    inv_n = 1.0 / float(n_real)
    q = q_ref[...]
    npad = outs[0].shape[0]
    scores = []
    for t in range(n_et):
        h_t = hproj[t * npad:(t + 1) * npad, :]
        mean_t = jnp.sum(h_t * rm, axis=0, keepdims=True) * inv_n    # [1, C]
        scores.append(jnp.sum(q * mean_t, axis=1, keepdims=True))    # [1, 1]
    mx = scores[0]
    for s_ in scores[1:]:
        mx = jnp.maximum(mx, s_)
    exps = [jnp.exp(s_ - mx) for s_ in scores]
    tot = exps[0]
    for e in exps[1:]:
        tot = tot + e
    inv_tot = pl.reciprocal(tot, approx=False)   # T-way softmax: exact, trivially cheap
    grouped = (exps[0] * inv_tot) * outs[0]
    for t in range(1, n_et):
        grouped = grouped + (exps[t] * inv_tot) * outs[t]

    # classifier + log_softmax; padded columns carry NEG_INF bias (no softmax impact)
    logits = (jnp.dot(grouped, cwt_ref[...], preferred_element_type=jnp.float32)
              + cb_ref[...])
    mm = jnp.max(logits, axis=1, keepdims=True)
    z = logits - mm
    lse = jnp.log(jnp.sum(jnp.exp(z), axis=1, keepdims=True))
    o_ref[...] = z - lse


# ------------------------------ HAN forward -------------------------------- #

def han_forward(params, x_dict, adjs, edge_types, head_node, heads, dim, num_classes,
                *, dst_tile=32, src_tile=128):
    c = heads * dim
    ets_head = [et for et in edge_types if et[2] == head_node]
    t_num = len(ets_head)
    nts = []
    for et in ets_head:
        for nt in (et[0], et[2]):
            if nt not in nts:
                nts.append(nt)

    n_dst = x_dict[head_node].shape[0]
    n_dst_pad = _round_up(n_dst, dst_tile)
    n_src_pad = _round_up(max(x_dict[et[0]].shape[0] for et in ets_head), src_tile)

    # ---- Kernel P: per-type projections + per-edge-type alphas (all tiny) ----
    prep_inputs = []
    for nt in nts:
        prep_inputs += [x_dict[nt], params["proj_wt"][nt], params["proj_b"][nt]]
    for et in ets_head:
        name = "__".join(et)
        prep_inputs += [_fold_lin(params["lin_src"][name], heads, dim).T,   # [H, C]
                        _fold_lin(params["lin_dst"][name], heads, dim)]     # [C, H]
    prep_out_shape = tuple(
        [jax.ShapeDtypeStruct((x_dict[nt].shape[0], c), jnp.float32) for nt in nts]
        + [s for et in ets_head for s in
           (jax.ShapeDtypeStruct((heads, x_dict[et[0]].shape[0]), jnp.float32),
            jax.ShapeDtypeStruct((x_dict[et[2]].shape[0], heads), jnp.float32))])
    prep = pl.pallas_call(
        functools.partial(_prep_kernel, nts=tuple(nts),
                          ets=tuple((et[0], et[2]) for et in ets_head)),
        out_shape=prep_out_shape,
        in_specs=[VMEM_SPEC] * len(prep_inputs),
        out_specs=tuple([VMEM_SPEC] * len(prep_out_shape)),
    )(*prep_inputs)
    xproj = {nt: prep[i] for i, nt in enumerate(nts)}
    alpha_srcT = [prep[len(nts) + 2 * j] for j in range(t_num)]
    alpha_dst = [prep[len(nts) + 2 * j + 1] for j in range(t_num)]

    # ---- wrapper-side layout plumbing: pad / cast / stack for the tiled kernel ----
    def pad_rows(a, n):
        return jnp.pad(a, ((0, n - a.shape[0]), (0, 0)))

    def pad_cols(a, n):
        return jnp.pad(a, ((0, 0), (0, n - a.shape[1])))

    x_src_all = jnp.stack([pad_rows(xproj[et[0]], n_src_pad).astype(jnp.bfloat16)
                           for et in ets_head])                    # [T, Nsrc_p, C] bf16
    asrcT_all = jnp.stack([pad_cols(alpha_srcT[j], n_src_pad)
                           for j in range(t_num)])                 # [T, H, Nsrc_p] f32
    adst_all = jnp.stack([pad_rows(alpha_dst[j], n_dst_pad)
                          for j in range(t_num)])                  # [T, Ndst_p, H] f32
    adj_all = jnp.stack([
        jnp.pad((adjs["__".join(et)] > 0).astype(jnp.int8),
                ((0, n_dst_pad - adjs["__".join(et)].shape[0]),
                 (0, n_src_pad - adjs["__".join(et)].shape[1])))
        for et in ets_head])                                       # [T, Ndst_p, Nsrc_p] i8
    hmask = jnp.repeat(jnp.eye(heads, dtype=jnp.float32), dim, axis=1)  # [H, C]

    # ---- Kernel A: gridded online-softmax attention + aggregation ----
    n_dst_tiles = n_dst_pad // dst_tile
    n_src_tiles = n_src_pad // src_tile
    out_all = pl.pallas_call(
        functools.partial(_attn_kernel, heads=heads, dst_tile=dst_tile),
        out_shape=jax.ShapeDtypeStruct((t_num, n_dst_pad, c), jnp.float32),
        grid_spec=pltpu.PrefetchScalarGridSpec(
            num_scalar_prefetch=0,
            grid=(n_dst_tiles, t_num, n_src_tiles),
            in_specs=[
                pl.BlockSpec((1, dst_tile, src_tile), lambda i, t, k: (t, i, k)),  # adj i8
                pl.BlockSpec((1, src_tile, c), lambda i, t, k: (t, k, 0)),         # x_src bf16
                pl.BlockSpec((1, heads, src_tile), lambda i, t, k: (t, 0, k)),     # alpha_srcT
                pl.BlockSpec((1, dst_tile, heads), lambda i, t, k: (t, i, 0)),     # alpha_dst
                pl.BlockSpec((heads, c), lambda i, t, k: (0, 0)),                  # hmask
            ],
            out_specs=pl.BlockSpec((1, dst_tile, c), lambda i, t, k: (t, i, 0)),
            scratch_shapes=[
                pltpu.VMEM((heads * dst_tile, 1), jnp.float32),   # m
                pltpu.VMEM((heads * dst_tile, 1), jnp.float32),   # l
                pltpu.VMEM((heads * dst_tile, c), jnp.float32),   # acc
            ]),
        compiler_params=pltpu.CompilerParams(
            dimension_semantics=("parallel", "arbitrary", "arbitrary"),
            vmem_limit_bytes=32 * 1024 * 1024),
    )(adj_all, x_src_all, asrcT_all, adst_all, hmask)

    # ---- Kernel B: semantic attention + classifier + log_softmax ----
    cls_wt_pad = jnp.zeros((c, PAD_CLASSES), jnp.float32).at[:, :num_classes].set(
        params["cls_wt"])
    cls_b_pad = jnp.full((1, PAD_CLASSES), NEG_INF, jnp.float32).at[:, :num_classes].set(
        params["cls_b"])
    rowmask = (jnp.arange(n_dst_pad) < n_dst).astype(jnp.float32).reshape(n_dst_pad, 1)
    out_pad = pl.pallas_call(
        functools.partial(_semantic_kernel, n_et=t_num, n_real=n_dst),
        out_shape=jax.ShapeDtypeStruct((n_dst_pad, PAD_CLASSES), jnp.float32),
        in_specs=[VMEM_SPEC] * 7,
        out_specs=VMEM_SPEC,
    )(out_all, rowmask, params["q"], params["k_wt"], params["k_b"],
      cls_wt_pad, cls_b_pad)
    return out_pad[:n_dst, :num_classes]


# Pure-JAX reference (mirrors the PyTorch math) for correctness checking.
def reference_forward(params, x_dict, adjs, edge_types, head_node, heads, dim):
    x_proj = {nt: x_dict[nt] @ params["proj_wt"][nt] + params["proj_b"][nt]
              for nt in x_dict}
    outs = []
    for et in edge_types:
        src_type, _, dst_type = et
        if dst_type != head_node:
            continue
        name = "__".join(et)
        x_s = x_proj[src_type].reshape(-1, heads, dim)
        x_d = x_proj[dst_type].reshape(-1, heads, dim)
        ls = params["lin_src"][name].reshape(1, heads, dim)
        ld = params["lin_dst"][name].reshape(1, heads, dim)
        a_s = (x_s * ls).sum(-1)                                      # [N_src, H]
        a_d = (x_d * ld).sum(-1)                                      # [N_dst, H]
        adj = adjs[name]
        scores = a_d[:, None, :] + a_s[None, :, :]                    # [N_dst, N_src, H]
        scores = jnp.where(scores > 0, scores, NEG_SLOPE * scores)
        masked = jnp.where(adj[..., None] > 0, scores, NEG_INF)
        m = masked.max(axis=1, keepdims=True)
        p = jnp.where(adj[..., None] > 0, jnp.exp(masked - m), 0.0)
        l = p.sum(axis=1, keepdims=True)
        attn = jnp.where(l > 0, p / jnp.where(l > 0, l, 1.0), 0.0)
        out = jnp.einsum("ijh,jhd->ihd", attn, x_s).reshape(-1, heads * dim)
        outs.append(jax.nn.relu(out))
    stacked = jnp.stack(outs)
    hmean = jnp.tanh(stacked @ params["k_wt"] + params["k_b"]).mean(axis=1)
    score = (params["q"] * hmean).sum(-1)
    sattn = jax.nn.softmax(score, axis=0)
    out = (sattn[:, None, None] * stacked).sum(0)
    logits = out @ params["cls_wt"] + params["cls_b"]
    return jax.nn.log_softmax(logits, axis=1)


# --------------------------------- main ------------------------------------ #

if __name__ == "__main__":
    # heterogeneous graph: node types "movie" (head) and "author";
    # edge types author->movie and movie->movie (both target the head node type).
    num_hidden = 32      # out_channels C
    num_heads = 4
    dim = num_hidden // num_heads
    num_classes = 3
    head_node = "movie"
    node_in = {"movie": 8, "author": 6}
    num_nodes = {"movie": 40, "author": 150}   # -> 2 dst tiles x 2 src tiles x 2 edge types
    edge_types = [("author", "to", "movie"), ("movie", "self", "movie")]

    key = jax.random.PRNGKey(0)
    keys = iter(jax.random.split(key, 64))

    # deterministic synthetic parameters (shapes follow HANConv / HAN.__init__)
    params = {"proj_wt": {}, "proj_b": {}, "lin_src": {}, "lin_dst": {}}
    for nt, f_in in node_in.items():
        params["proj_wt"][nt] = 0.2 * jax.random.normal(next(keys), (f_in, num_hidden))
        params["proj_b"][nt] = 0.1 * jax.random.normal(next(keys), (1, num_hidden))
    for et in edge_types:
        name = "__".join(et)
        params["lin_src"][name] = 0.2 * jax.random.normal(next(keys), (1, num_hidden))
        params["lin_dst"][name] = 0.2 * jax.random.normal(next(keys), (1, num_hidden))
    params["q"] = 0.2 * jax.random.normal(next(keys), (1, num_hidden))
    params["k_wt"] = 0.2 * jax.random.normal(next(keys), (num_hidden, num_hidden))
    params["k_b"] = 0.1 * jax.random.normal(next(keys), (1, num_hidden))
    params["cls_wt"] = 0.2 * jax.random.normal(next(keys), (num_hidden, num_classes))
    params["cls_b"] = 0.1 * jax.random.normal(next(keys), (1, num_classes))

    # features
    x_dict = {nt: jax.random.normal(next(keys), (num_nodes[nt], node_in[nt]))
              for nt in node_in}

    # dense adjacency per edge type ([N_dst, N_src]); edge_weight_dict is None in
    # HAN.forward, i.e. unit weights.
    adjs = {}
    for et in edge_types:
        src_type, _, dst_type = et
        name = "__".join(et)
        adjs[name] = (
            jax.random.uniform(next(keys), (num_nodes[dst_type], num_nodes[src_type]))
            < 0.3
        ).astype(jnp.float32)
    # exercise isolated-destination-row handling (per edge type and fully isolated)
    name0, name1 = "__".join(edge_types[0]), "__".join(edge_types[1])
    adjs[name0] = adjs[name0].at[0:2, :].set(0.0)
    adjs[name0] = adjs[name0].at[5, :].set(0.0)
    adjs[name1] = adjs[name1].at[5, :].set(0.0)

    out = han_forward(params, x_dict, adjs, edge_types, head_node,
                      num_heads, dim, num_classes)
    out = jax.block_until_ready(out)

    ref = reference_forward(params, x_dict, adjs, edge_types, head_node,
                            num_heads, dim)
    assert out.shape == (num_nodes[head_node], num_classes)
    # Tolerance accounts for bf16 MXU operands in the aggregation matmul and the
    # EUP approximate reciprocal in the per-edge softmax (f32 reference).
    assert jnp.allclose(out, ref, atol=2e-2, rtol=2e-2), (
        "mismatch vs reference, max abs diff = "
        f"{float(jnp.max(jnp.abs(out - ref)))}")

    print("KERNEL_OK")
</pallas_src>

<mosaic_0001>
module attributes {stable_mosaic.version = 11 : i64} {
  func.func @_prep_kernel(%arg0: memref<150x6xf32, #tpu.memory_space<vmem>>, %arg1: memref<6x32xf32, #tpu.memory_space<vmem>>, %arg2: memref<1x32xf32, #tpu.memory_space<vmem>>, %arg3: memref<40x8xf32, #tpu.memory_space<vmem>>, %arg4: memref<8x32xf32, #tpu.memory_space<vmem>>, %arg5: memref<1x32xf32, #tpu.memory_space<vmem>>, %arg6: memref<4x32xf32, #tpu.memory_space<vmem>>, %arg7: memref<32x4xf32, #tpu.memory_space<vmem>>, %arg8: memref<4x32xf32, #tpu.memory_space<vmem>>, %arg9: memref<32x4xf32, #tpu.memory_space<vmem>>, %arg10: memref<150x32xf32, #tpu.memory_space<vmem>>, %arg11: memref<40x32xf32, #tpu.memory_space<vmem>>, %arg12: memref<4x150xf32, #tpu.memory_space<vmem>>, %arg13: memref<40x4xf32, #tpu.memory_space<vmem>>, %arg14: memref<4x40xf32, #tpu.memory_space<vmem>>, %arg15: memref<40x4xf32, #tpu.memory_space<vmem>>) attributes {dimension_semantics = [], scalar_prefetch = 0 : i64, scratch_operands = 0 : i64, tpu.core_type = #tpu.core_type<tc>} {
    %c0 = arith.constant 0 : index
    %c0_0 = arith.constant 0 : index
    %0 = vector.load %arg0[%c0, %c0_0] : memref<150x6xf32, #tpu.memory_space<vmem>>, vector<150x6xf32>
    %c0_1 = arith.constant 0 : index
    %c0_2 = arith.constant 0 : index
    %1 = vector.load %arg1[%c0_1, %c0_2] : memref<6x32xf32, #tpu.memory_space<vmem>>, vector<6x32xf32>
    %cst = arith.constant dense<0.000000e+00> : vector<150x32xf32>
    %2 = tpu.matmul %0, %1, %cst {dimension_numbers = #tpu.dot_dimension_numbers<[1], [0], [0], [1], [0, 0, 1, 1], [], []>} : vector<150x6xf32>, vector<6x32xf32>, vector<150x32xf32> -> vector<150x32xf32>
    %c0_3 = arith.constant 0 : index
    %c0_4 = arith.constant 0 : index
    %3 = vector.load %arg2[%c0_3, %c0_4] : memref<1x32xf32, #tpu.memory_space<vmem>>, vector<1x32xf32>
    %4 = vector.broadcast %3 : vector<1x32xf32> to vector<150x32xf32>
    %5 = arith.addf %2, %4 : vector<150x32xf32>
    %c0_5 = arith.constant 0 : index
    %c0_6 = arith.constant 0 : index
    %6 = vector.load %arg10[%c0_5, %c0_6] : memref<150x32xf32, #tpu.memory_space<vmem>>, vector<150x32xf32>
    tpu.vector_store %arg10[%c0_5, %c0_6], %5 {strides = array<i32>} : memref<150x32xf32, #tpu.memory_space<vmem>>, vector<150x32xf32>,
    %c0_7 = arith.constant 0 : index
    %c0_8 = arith.constant 0 : index
    %7 = vector.load %arg3[%c0_7, %c0_8] : memref<40x8xf32, #tpu.memory_space<vmem>>, vector<40x8xf32>
    %c0_9 = arith.constant 0 : index
    %c0_10 = arith.constant 0 : index
    %8 = vector.load %arg4[%c0_9, %c0_10] : memref<8x32xf32, #tpu.memory_space<vmem>>, vector<8x32xf32>
    %cst_11 = arith.constant dense<0.000000e+00> : vector<40x32xf32>
    %9 = tpu.matmul %7, %8, %cst_11 {dimension_numbers = #tpu.dot_dimension_numbers<[1], [0], [0], [1], [0, 0, 1, 1], [], []>} : vector<40x8xf32>, vector<8x32xf32>, vector<40x32xf32> -> vector<40x32xf32>
    %c0_12 = arith.constant 0 : index
    %c0_13 = arith.constant 0 : index
    %10 = vector.load %arg5[%c0_12, %c0_13] : memref<1x32xf32, #tpu.memory_space<vmem>>, vector<1x32xf32>
    %11 = vector.broadcast %10 : vector<1x32xf32> to vector<40x32xf32>
    %12 = arith.addf %9, %11 : vector<40x32xf32>
    %c0_14 = arith.constant 0 : index
    %c0_15 = arith.constant 0 : index
    %13 = vector.load %arg11[%c0_14, %c0_15] : memref<40x32xf32, #tpu.memory_space<vmem>>, vector<40x32xf32>
    tpu.vector_store %arg11[%c0_14, %c0_15], %12 {strides = array<i32>} : memref<40x32xf32, #tpu.memory_space<vmem>>, vector<40x32xf32>,
    %c0_16 = arith.constant 0 : index
    %c0_17 = arith.constant 0 : index
    %14 = vector.load %arg6[%c0_16, %c0_17] : memref<4x32xf32, #tpu.memory_space<vmem>>, vector<4x32xf32>
    %c0_18 = arith.constant 0 : index
    %c0_19 = arith.constant 0 : index
    %15 = vector.load %arg7[%c0_18, %c0_19] : memref<32x4xf32, #tpu.memory_space<vmem>>, vector<32x4xf32>
    %cst_20 = arith.constant dense<0.000000e+00> : vector<4x150xf32>
    %16 = tpu.matmul %14, %5, %cst_20 {dimension_numbers = #tpu.dot_dimension_numbers<[1], [1], [0], [0], [0, 0, 1, 0], [], []>} : vector<4x32xf32>, vector<150x32xf32>, vector<4x150xf32> -> vector<4x150xf32>
    %cst_21 = arith.constant dense<0.000000e+00> : vector<40x4xf32>
    %17 = tpu.matmul %12, %15, %cst_21 {dimension_numbers = #tpu.dot_dimension_numbers<[1], [0], [0], [1], [0, 0, 1, 1], [], []>} : vector<40x32xf32>, vector<32x4xf32>, vector<40x4xf32> -> vector<40x4xf32>
    %c0_22 = arith.constant 0 : index
    %c0_23 = arith.constant 0 : index
    %18 = vector.load %arg12[%c0_22, %c0_23] : memref<4x150xf32, #tpu.memory_space<vmem>>, vector<4x150xf32>
    tpu.vector_store %arg12[%c0_22, %c0_23], %16 {strides = array<i32>} : memref<4x150xf32, #tpu.memory_space<vmem>>, vector<4x150xf32>,
    %c0_24 = arith.constant 0 : index
    %c0_25 = arith.constant 0 : index
    %19 = vector.load %arg13[%c0_24, %c0_25] : memref<40x4xf32, #tpu.memory_space<vmem>>, vector<40x4xf32>
    tpu.vector_store %arg13[%c0_24, %c0_25], %17 {strides = array<i32>} : memref<40x4xf32, #tpu.memory_space<vmem>>, vector<40x4xf32>,
    %c0_26 = arith.constant 0 : index
    %c0_27 = arith.constant 0 : index
    %20 = vector.load %arg8[%c0_26, %c0_27] : memref<4x32xf32, #tpu.memory_space<vmem>>, vector<4x32xf32>
    %c0_28 = arith.constant 0 : index
    %c0_29 = arith.constant 0 : index
    %21 = vector.load %arg9[%c0_28, %c0_29] : memref<32x4xf32, #tpu.memory_space<vmem>>, vector<32x4xf32>
    %cst_30 = arith.constant dense<0.000000e+00> : vector<4x40xf32>
    %22 = tpu.matmul %20, %12, %cst_30 {dimension_numbers = #tpu.dot_dimension_numbers<[1], [1], [0], [0], [0, 0, 1, 0], [], []>} : vector<4x32xf32>, vector<40x32xf32>, vector<4x40xf32> -> vector<4x40xf32>
    %cst_31 = arith.constant dense<0.000000e+00> : vector<40x4xf32>
    %23 = tpu.matmul %12, %21, %cst_31 {dimension_numbers = #tpu.dot_dimension_numbers<[1], [0], [0], [1], [0, 0, 1, 1], [], []>} : vector<40x32xf32>, vector<32x4xf32>, vector<40x4xf32> -> vector<40x4xf32>
    %c0_32 = arith.constant 0 : index
    %c0_33 = arith.constant 0 : index
    %24 = vector.load %arg14[%c0_32, %c0_33] : memref<4x40xf32, #tpu.memory_space<vmem>>, vector<4x40xf32>
    tpu.vector_store %arg14[%c0_32, %c0_33], %22 {strides = array<i32>} : memref<4x40xf32, #tpu.memory_space<vmem>>, vector<4x40xf32>,
    %c0_34 = arith.constant 0 : index
    %c0_35 = arith.constant 0 : index
    %25 = vector.load %arg15[%c0_34, %c0_35] : memref<40x4xf32, #tpu.memory_space<vmem>>, vector<40x4xf32>
    tpu.vector_store %arg15[%c0_34, %c0_35], %23 {strides = array<i32>} : memref<40x4xf32, #tpu.memory_space<vmem>>, vector<40x4xf32>,
    return
  }
}

</mosaic_0001>

<bundles_post_ra>
// kernel: tpu_custom_call.1
= control target key start
LH: loop header
LB: loop body
LE: loop exit
PB: predicated region body
PF: predicated region fallthrough
CT: control target
= control target key end

     0   :  { %21 = vsyncpa [#allocation3], 0  ;;  %vm128_vm0 = vcmask 1045504   ;;  %v1268_v2 = vmov 0.0   ;;  %vm1269_vm1 = vmmov 0   ;;  %vm70_vm2 = vcmask 48128   ;;  %s1833_s0 = inlined_call_operand.vmem [shape: f32[150,6], index: 0, kind: input, shape index: {}]   ;;  %s1834_s1 = inlined_call_operand.vmem [shape: f32[6,32], index: 1, kind: input, shape index: {}]   ;;  %s1835_s2 = inlined_call_operand.vmem [shape: f32[1,32], index: 2, kind: input, shape index: {}]   ;;  %s1836_s3 = inlined_call_operand.vmem [shape: f32[40,8], index: 3, kind: input, shape index: {}]   ;;  %s1837_s4 = inlined_call_operand.vmem [shape: f32[8,32], index: 4, kind: input, shape index: {}]   ;;  %s1838_s5 = inlined_call_operand.vmem [shape: f32[1,32], index: 5, kind: input, shape index: {}]   ;;  %s1839_s6 = inlined_call_operand.vmem [shape: f32[4,32], index: 6, kind: input, shape index: {}]   ;;  %s1840_s7 = inlined_call_operand.vmem [shape: f32[32,4], index: 7, kind: input, shape index: {}]   ;;  %s1841_s8 = inlined_call_operand.vmem [shape: f32[4,32], index: 8, kind: input, shape index: {}]   ;;  %s1842_s9 = inlined_call_operand.vmem [shape: f32[32,4], index: 9, kind: input, shape index: {}]   ;;  %s1843_s10 = inlined_call_operand.vmem [shape: f32[150,32], index: 10, kind: output, shape index: {0}]   ;;  %s1844_s11 = inlined_call_operand.vmem [shape: f32[40,32], index: 11, kind: output, shape index: {1}]   ;;  %s1845_s12 = inlined_call_operand.hbm [shape: f32[4,150], index: 12, kind: output, shape index: {2}]   ;;  %s1846_s13 = inlined_call_operand.vmem [shape: f32[40,4], index: 13, kind: output, shape index: {3}]   ;;  %s1847_s14 = inlined_call_operand.hbm [shape: f32[4,40], index: 14, kind: output, shape index: {4}]   ;;  %s1848_s15 = inlined_call_operand.vmem [shape: f32[40,4], index: 15, kind: output, shape index: {5}]  }
   0x1   :  { %v62_v0 = vld [vmem:[%s1834_s1] sm:$0x3f]  ;;  %1024 = vmatprep.subr.mxu0 %v1268_v2  ;;  %1026 = vmatprep.mubr.msk.f32.mxu0 %vm1269_vm1, %v1268_v2  ;;  %vm326_vm3 = vcmask 64512   ;;  %v44_v5 = vld [vmem:[%s1833_s0 + $0x8] sm:$0xff]  ;;  %v1270_v6 = vmov 0.0|0.0   ;;  %v45_v8 = vld [vmem:[%s1833_s0 + $0x10] sm:$0xff] }
   0x2   :  { %v43_v1 = vld [vmem:[%s1833_s0] sm:$0xff]  ;;  %1025 = vmatpush3.msk.msra.mxu0 %vm128_vm0, %v62_v0  ;;  %1083 = vmatprep.subr.mxu1 %v1268_v2  ;;  %v314_v7 = vld [vmem:[%s1836_s3 + $0x8] sm:$0xff] }
   0x3   :  { %v318_v3 = vld [vmem:[%s1837_s4] sm:$0xff]  ;;  %1027 = vmatmul.mubr.msk.f32.vlgmr.msra.gmra.mrb[0].mxu0 %vm70_vm2, %v43_v1  ;;  %1085 = vmatprep.mubr.msk.f32.mxu1 %vm1269_vm1, %v1268_v2 }
   0x4   :  { %v313_v4 = vld [vmem:[%s1836_s3] sm:$0xff]  ;;  %1084 = vmatpush3.msra.mxu1 %v318_v3  ;;  %1029 = vmatprep.mubr.msk.f32.mxu0 %vm1269_vm1, %v1268_v2 }
   0x5   :  { %1086 = vmatmul.mubr.msk.f32.vlgmr.msra.gmra.mrb[0].mxu1 %vm326_vm3, %v313_v4  ;;  %1195 = vmatprep.subr.bf16.mxu1 %v1270_v6 }
   0x6   :  { %1088 = vmatprep.mubr.msk.f32.mxu1 %vm1269_vm1, %v1268_v2  ;;  %1159 = vmatprep.subr.bf16.mxu0 %v1270_v6 }
   0x7   :  { %1030 = vmatmul.mubr.msk.f32.gmra.mrb[2].mxu0 %vm70_vm2, %v44_v5 }
   0x8   :  { %1032 = vmatprep.mubr.msk.f32.mxu0 %vm1269_vm1, %v1268_v2 }
   0x9   :  { %1089 = vmatmul.mubr.msk.f32.gmra.mrb[2].mxu1 %vm326_vm3, %v314_v7 }
   0xa   :  { %22 = vsyncpa [#allocation5], 0  ;;  %1091 = vmatprep.mubr.msk.f32.mxu1 %vm1269_vm1, %v1268_v2  ;;  %v315_v9 = vld [vmem:[%s1836_s3 + $0x10] sm:$0xff]  ;;  %v46_v10 = vld [vmem:[%s1833_s0 + $0x18] sm:$0xff]  ;;  %vm292_vm4 = vcmask 261120   ;;  %vm311_vm6 = vcmask 259072  }
   0xb   :  { %1033 = vmatmul.mubr.msk.f32.gmra.mrb[4].mxu0 %vm70_vm2, %v45_v8  ;;  %v316_v11 = vld [vmem:[%s1836_s3 + $0x18] sm:$0xff]  ;;  %v47_v12 = vld [vmem:[%s1833_s0 + $0x20] sm:$0xff]  ;;  %v48_v14 = vld [vmem:[%s1833_s0 + $0x28] sm:$0xff]  ;;  %vm686_vm7 = vcmask 31744   ;;  %s1271_s1 = smov [#allocation4]   ;;  %vm860_vm8 = vcmask 322560  }
   0xc   :  { %1035 = vmatprep.mubr.msk.f32.mxu0 %vm1269_vm1, %v1268_v2  ;;  %v317_v13 = vld [vmem:[%s1836_s3 + $0x20] sm:$0xff]  ;;  %v49_v15 = vld [vmem:[%s1833_s0 + $0x30] sm:$0xff]  ;;  %v50_v16 = vld [vmem:[%s1833_s0 + $0x38] sm:$0xff]  ;;  %s889_s24 = sshll.u32 %s1271_s1, 4  ;;  %s890_s24 = int_to_ptr.vmem [resolvable:$true] %s889_s24 }
   0xd   :  { %1092 = vmatmul.mubr.msk.f32.gmra.mrb[4].mxu1 %vm326_vm3, %v315_v9  ;;  %v51_v17 = vld [vmem:[%s1833_s0 + $0x40] sm:$0xff]  ;;  %v52_v18 = vld [vmem:[%s1833_s0 + $0x48] sm:$0xff]  ;;  %v53_v19 = vld [vmem:[%s1833_s0 + $0x50] sm:$0xff]  ;;  %s1220_s25 = scalar_lea.vmem %s890_s24, 64  ;;  %p1225_p1 = scmp.lt.s32.totalorder %s890_s24, %s890_s24 }
   0xe   :  { %1094 = vmatprep.mubr.msk.f32.mxu1 %vm1269_vm1, %v1268_v2  ;;  %v54_v20 = vld [vmem:[%s1833_s0 + $0x58] sm:$0xff]  ;;  %v55_v21 = vld [vmem:[%s1833_s0 + $0x60] sm:$0xff]  ;;  %v56_v22 = vld [vmem:[%s1833_s0 + $0x68] sm:$0xff]  ;;  %p1221_p0 = scmp.ne.s32.totalorder %s890_s24, %s1220_s25  ;;  %p1226_p2 = scmp.lt.s32.totalorder %s1220_s25, %s1220_s25 }
   0xf   :  { %1036 = vmatmul.mubr.msk.f32.gmra.mrb[6].mxu0 %vm70_vm2, %v46_v10  ;;  %v57_v23 = vld [vmem:[%s1833_s0 + $0x70] sm:$0xff]  ;;  %v58_v24 = vld [vmem:[%s1833_s0 + $0x78] sm:$0xff]  ;;  %v59_v25 = vld [vmem:[%s1833_s0 + $0x80] sm:$0xff] }
  0x10   :  { %1038 = vmatprep.mubr.msk.f32.mxu0 %vm1269_vm1, %v1268_v2  ;;  %v60_v26 = vld [vmem:[%s1833_s0 + $0x88] sm:$0xff]  ;;  %v61_v27 = vld [vmem:[%s1833_s0 + $0x90] sm:$0x3f]  ;;  %v438_v28 = vld [vmem:[%s1840_s7] sm:$0xff]  ;;  %p1227_p3 = por %p1226_p2, %p1225_p1 }
  0x11   :  { %1095 = vmatmul.mubr.msk.f32.gmra.mrb[6].mxu1 %vm326_vm3, %v316_v11  ;;  %v439_v29 = vld [vmem:[%s1840_s7 + $0x8] sm:$0xff]  ;;  %v440_v31 = vld [vmem:[%s1840_s7 + $0x10] sm:$0xff]  ;;  %v441_v32 = vld [vmem:[%s1840_s7 + $0x18] sm:$0xff] }
  0x12   :  { %1097 = vmatprep.mubr.msk.f32.mxu1 %vm1269_vm1, %v1268_v2  ;;  %v1196_v30 = vpack.c.bf16 %v439_v29, %v438_v28  ;;  %v1199_v33 = vpack.c.bf16 %v441_v32, %v440_v31  ;;  %v1527_v34 = vld [vmem:[%s1835_s2] ss:$0 sm:$0xff]  ;;  %vm1549_vm5 = vmpackc.low %vm292_vm4, %vm292_vm4  ;;  %p1228_p4 = pnand %p1227_p3, %p1221_p0 }
  0x13   :  { %1039 = vmatmul.mubr.msk.f32.gmra.mrb[8].mxu0 %vm70_vm2, %v47_v12  ;;  %v932_v36 = vld [vmem:[%s1838_s5] ss:$0 sm:$0xff] }
  0x14   :  { %1041 = vmatprep.mubr.msk.f32.mxu0 %vm1269_vm1, %v1268_v2  ;;  %1197 = vmatpush3.bf16.msra.mxu1 %v1196_v30 }
  0x15   :  { %1098 = vmatmul.mubr.msk.f32.gmra.mrb[8].mxu1 %vm326_vm3, %v317_v13  ;;  %1198 = vmatprep.subr.bf16.mxu1 %v1270_v6 }
  0x16   :  { %1108 = vmatprep.mubr.msk.f32.mxu1 %vm1269_vm1, %v1268_v2 }
  0x17   :  { %1042 = vmatmul.mubr.msk.f32.gmra.mrb[10].mxu0 %vm70_vm2, %v48_v14  ;;  %v693_v14 = vld [vmem:[%s1842_s9] sm:$0xff] }
  0x18   :  { %1044 = vmatprep.mubr.msk.f32.mxu0 %vm1269_vm1, %v1268_v2  ;;  %1200 = vmatpush3.bf16.msra.mxu1 %v1199_v33 }
  0x19   :  { %1201 = vmatprep.subr.bf16.mxu1 %v1270_v6 }
  0x1b   :  { %1045 = vmatmul.mubr.msk.f32.gmra.mrb[12].mxu0 %vm70_vm2, %v49_v15  ;;  %v694_v15 = vld [vmem:[%s1842_s9 + $0x8] sm:$0xff] }
  0x1c   :  { %1047 = vmatprep.mubr.msk.f32.mxu0 %vm1269_vm1, %v1268_v2 }
  0x1f   :  { %1048 = vmatmul.mubr.msk.f32.gmra.mrb[14].mxu0 %vm70_vm2, %v50_v16 }
  0x20   :  { %1050 = vmatprep.mubr.msk.f32.mxu0 %vm1269_vm1, %v1268_v2 }
  0x23   :  { %1051 = vmatmul.mubr.msk.f32.gmra.mrb[16].mxu0 %vm70_vm2, %v51_v17 }
  0x24   :  { %1053 = vmatprep.mubr.msk.f32.mxu0 %vm1269_vm1, %v1268_v2 }
  0x27   :  { %1054 = vmatmul.mubr.msk.f32.gmra.mrb[18].mxu0 %vm70_vm2, %v52_v18  ;;  %v692_v18 = vld [vmem:[%s1841_s8] sm:$0xf] }
  0x28   :  { %1056 = vmatprep.mubr.msk.f32.mxu0 %vm1269_vm1, %v1268_v2 }
  0x2b   :  { %1057 = vmatmul.mubr.msk.f32.gmra.mrb[20].mxu0 %vm70_vm2, %v53_v19  ;;  %v1210_v19 = vpack.c.bf16 %v694_v15, %v693_v14 }
  0x2c   :  { %1059 = vmatprep.mubr.msk.f32.mxu0 %vm1269_vm1, %v1268_v2 }
  0x2f   :  { %1060 = vmatmul.mubr.msk.f32.gmra.mrb[22].mxu0 %vm70_vm2, %v54_v20 }
  0x30   :  { %1062 = vmatprep.mubr.msk.f32.mxu0 %vm1269_vm1, %v1268_v2 }
  0x33   :  { %1063 = vmatmul.mubr.msk.f32.gmra.mrb[24].mxu0 %vm70_vm2, %v55_v21  ;;  %v695_v21 = vld [vmem:[%s1842_s9 + $0x10] sm:$0xff] }
  0x34   :  { %1065 = vmatprep.mubr.msk.f32.mxu0 %vm1269_vm1, %v1268_v2 }
  0x37   :  { %1066 = vmatmul.mubr.msk.f32.gmra.mrb[26].mxu0 %vm70_vm2, %v56_v22  ;;  %v696_v22 = vld [vmem:[%s1842_s9 + $0x18] sm:$0xff] }
  0x38   :  { %1068 = vmatprep.mubr.msk.f32.mxu0 %vm1269_vm1, %v1268_v2 }
  0x3b   :  { %1069 = vmatmul.mubr.msk.f32.gmra.mrb[28].mxu0 %vm70_vm2, %v57_v23 }
  0x3c   :  { %1071 = vmatprep.mubr.msk.f32.mxu0 %vm1269_vm1, %v1268_v2 }
  0x3f   :  { %1072 = vmatmul.mubr.msk.f32.gmra.mrb[30].mxu0 %vm70_vm2, %v58_v24 }
  0x40   :  { %1074 = vmatprep.mubr.msk.f32.mxu0 %vm1269_vm1, %v1268_v2 }
  0x43   :  { %1075 = vmatmul.mubr.msk.f32.gmra.mrb[32].mxu0 %vm70_vm2, %v59_v25 }
  0x44   :  { %1077 = vmatprep.mubr.msk.f32.mxu0 %vm1269_vm1, %v1268_v2 }
  0x47   :  { %1078 = vmatmul.mubr.msk.f32.gmra.mrb[34].mxu0 %vm70_vm2, %v60_v26  ;;  %v1213_v26 = vpack.c.bf16 %v696_v22, %v695_v21 }
  0x48   :  { %1080 = vmatprep.mubr.msk.f32.mxu0 %vm1269_vm1, %v1268_v2 }
  0x4b   :  { %1081 = vmatmul.mubr.msk.f32.gmra.mrb[36].mxu0 %vm70_vm2, %v61_v27 }
  0x4c   :  { %566 = vmatprep.mubr.f32.mxu0 %v1268_v2 }
  0xd6   :  { %v198_v35 = vpop.f32.mrb[0].mxu0 }
  0xd7   :  { %v199_v37 = vadd.f32 %v1527_v34, %v198_v35  ;;  %v1028_v38 = vpop.f32.mrb[1].mxu0 }
  0xd8   :  { %v408_v39 = vpop.f32.mrb[0].mxu1 }
  0xd9   :  { %293 = vst.msk [vmem:[%s1843_s10] sm:$0xff] %vm292_vm4, %v199_v37  ;;  %v1537_v40 = vadd.f32 %v932_v36, %v408_v39  ;;  %v1087_v41 = vpop.f32.mrb[1].mxu1 }
  0xda   :  { %v203_v42 = vpop.f32.mrb[2].mxu0 }
  0xdb   :  { %v204_v43 = vadd.f32 %v1527_v34, %v203_v42  ;;  %v1031_v44 = vpop.f32.mrb[3].mxu0  ;;  %432 = vst.msk [vmem:[%s1844_s11] sm:$0xff] %vm292_vm4, %v1537_v40  ;;  %1109 = vmatmul.mubr.msk.f32.vlgmr.msra.gmra.mrb[10].mxu1 %vm292_vm4, %v1537_v40 }
  0xdc   :  { %v413_v45 = vpop.f32.mrb[2].mxu1  ;;  %1111 = vmatprep.mubr.msk.f32.mxu1 %vm1269_vm1, %v1268_v2 }
  0xdd   :  { %294 = vst.msk [vmem:[%s1843_s10 + $0x8] sm:$0xff] %vm292_vm4, %v204_v43  ;;  %v1160_v47 = vpack.c.bf16 %v204_v43, %v199_v37  ;;  %v1559_v48 = vadd.f32 %v932_v36, %v413_v45  ;;  %v1090_v49 = vpop.f32.mrb[3].mxu1 }
  0xde   :  { %v208_v50 = vpop.f32.mrb[4].mxu0 }
  0xdf   :  { %v209_v51 = vadd.f32 %v1527_v34, %v208_v50  ;;  %433 = vst.msk [vmem:[%s1844_s11 + $0x8] sm:$0xff] %vm292_vm4, %v1559_v48  ;;  %v1202_v52 = vpack.c.bf16 %v1559_v48, %v1537_v40  ;;  %v1034_v53 = vpop.f32.mrb[5].mxu0  ;;  %1162 = vmatpush1.bf16.xpose.msk.msra.mxu0 %vm1549_vm5, %v1160_v47  ;;  %1112 = vmatmul.mubr.msk.f32.gmra.mrb[12].mxu1 %vm292_vm4, %v1559_v48 }
  0xe0   :  { %v418_v54 = vpop.f32.mrb[4].mxu1  ;;  %1163 = vmatprep.subr.bf16.mxu0 %v1270_v6  ;;  %1114 = vmatprep.mubr.msk.f32.mxu1 %vm1269_vm1, %v1268_v2 }
  0xe1   :  { %295 = vst.msk [vmem:[%s1843_s10 + $0x10] sm:$0xff] %vm292_vm4, %v209_v51  ;;  %1204 = vmatpush3.bf16.xpose.msk.msra.mxu1 %vm1549_vm5, %v1202_v52  ;;  %v1582_v55 = vadd.f32 %v932_v36, %v418_v54  ;;  %v1093_v56 = vpop.f32.mrb[5].mxu1 }
  0xe2   :  { %v213_v57 = vpop.f32.mrb[6].mxu0  ;;  %1205 = vmatprep.subr.bf16.mxu1 %v1270_v6 }
  0xe3   :  { %v214_v58 = vadd.f32 %v1527_v34, %v213_v57  ;;  %v1037_v59 = vpop.f32.mrb[7].mxu0  ;;  %434 = vst.msk [vmem:[%s1844_s11 + $0x10] sm:$0xff] %vm292_vm4, %v1582_v55  ;;  %1115 = vmatmul.mubr.msk.f32.gmra.mrb[14].mxu1 %vm292_vm4, %v1582_v55 }
  0xe4   :  { %v423_v60 = vpop.f32.mrb[6].mxu1  ;;  %1117 = vmatprep.mubr.msk.f32.mxu1 %vm1269_vm1, %v1268_v2 }
  0xe5   :  { %296 = vst.msk [vmem:[%s1843_s10 + $0x18] sm:$0xff] %vm292_vm4, %v214_v58  ;;  %v1164_v61 = vpack.c.bf16 %v214_v58, %v209_v51  ;;  %v1599_v62 = vadd.f32 %v932_v36, %v423_v60  ;;  %v1096_v63 = vpop.f32.mrb[7].mxu1 }
  0xe6   :  { %v218_v0 = vpop.f32.mrb[8].mxu0 }
  0xe7   :  { %v219_v1 = vadd.f32 %v1527_v34, %v218_v0  ;;  %435 = vst.msk [vmem:[%s1844_s11 + $0x18] sm:$0xff] %vm292_vm4, %v1599_v62  ;;  %v1206_v3 = vpack.c.bf16 %v1599_v62, %v1582_v55  ;;  %v1040_v4 = vpop.f32.mrb[9].mxu0  ;;  %1166 = vmatpush1.bf16.xpose.msk.msra.mxu0 %vm1549_vm5, %v1164_v61  ;;  %1118 = vmatmul.mubr.msk.f32.gmra.mrb[16].mxu1 %vm292_vm4, %v1599_v62 }
  0xe8   :  { %1167 = vmatprep.subr.bf16.mxu0 %v1270_v6  ;;  %v428_v5 = vpop.f32.mrb[8].mxu1  ;;  %1120 = vmatprep.mubr.msk.f32.mxu1 %vm1269_vm1, %v1268_v2 }
  0xe9   :  { %297 = vst.msk [vmem:[%s1843_s10 + $0x20] sm:$0xff] %vm292_vm4, %v219_v1  ;;  %1208 = vmatpush3.bf16.xpose.msk.msra.mxu1 %vm1549_vm5, %v1206_v3  ;;  %v1622_v7 = vadd.f32 %v932_v36, %v428_v5  ;;  %v1099_v8 = vpop.f32.mrb[9].mxu1  ;;  %v437_v3 = vld [vmem:[%s1839_s6] sm:$0xf] }
  0xea   :  { %v223_v9 = vpop.f32.mrb[10].mxu0  ;;  %1131 = vmatprep.subr.mxu1 %v1268_v2 }
  0xeb   :  { %v224_v10 = vadd.f32 %v1527_v34, %v223_v9  ;;  %v1043_v11 = vpop.f32.mrb[11].mxu0  ;;  %436 = vst.msk [vmem:[%s1844_s11 + $0x20] sm:$0xff] %vm292_vm4, %v1622_v7  ;;  %1121 = vmatmul.mubr.msk.f32.gmra.mrb[18].mxu1 %vm292_vm4, %v1622_v7 }
  0xec   :  { %1133 = vmatprep.mubr.msk.f32.mxu1 %vm1269_vm1, %v1268_v2 }
  0xed   :  { %298 = vst.msk [vmem:[%s1843_s10 + $0x28] sm:$0xff] %vm292_vm4, %v224_v10  ;;  %v1168_v12 = vpack.c.bf16 %v224_v10, %v219_v1 }
  0xee   :  { %v228_v13 = vpop.f32.mrb[12].mxu0 }
  0xef   :  { %v229_v16 = vadd.f32 %v1527_v34, %v228_v13  ;;  %v1046_v17 = vpop.f32.mrb[13].mxu0  ;;  %1170 = vmatpush1.bf16.xpose.msk.msra.mxu0 %vm1549_vm5, %v1168_v12 }
  0xf0   :  { %1171 = vmatprep.subr.bf16.mxu0 %v1270_v6 }
  0xf1   :  { %299 = vst.msk [vmem:[%s1843_s10 + $0x30] sm:$0xff] %vm292_vm4, %v229_v16  ;;  %1132 = vmatpush3.xpose.msk.msra.mxu1 %vm292_vm4, %v1622_v7 }
  0xf2   :  { %v233_v20 = vpop.f32.mrb[14].mxu0  ;;  %1209 = vmatprep.subr.bf16.mxu1 %v1270_v6 }
  0xf3   :  { %v234_v23 = vadd.f32 %v1527_v34, %v233_v20  ;;  %v1049_v24 = vpop.f32.mrb[15].mxu0 }
  0xf4   :  { %1134 = vmatmul.mubr.msk.f32.vlgmr.msra.gmra.mrb[20].mxu1 %vm292_vm4, %v692_v18 }
  0xf5   :  { %300 = vst.msk [vmem:[%s1843_s10 + $0x38] sm:$0xff] %vm292_vm4, %v234_v23  ;;  %v1172_v25 = vpack.c.bf16 %v234_v23, %v229_v16  ;;  %1211 = vmatpush3.bf16.msra.mxu1 %v1210_v19  ;;  %1144 = vmatprep.mubr.msk.f32.mxu1 %vm1269_vm1, %v1268_v2 }
  0xf6   :  { %v238_v27 = vpop.f32.mrb[16].mxu0  ;;  %1212 = vmatprep.subr.bf16.mxu1 %v1270_v6 }
  0xf7   :  { %v239_v28 = vadd.f32 %v1527_v34, %v238_v27  ;;  %v1052_v29 = vpop.f32.mrb[17].mxu0  ;;  %1174 = vmatpush1.bf16.xpose.msk.msra.mxu0 %vm1549_vm5, %v1172_v25 }
  0xf8   :  { %1175 = vmatprep.subr.bf16.mxu0 %v1270_v6 }
  0xf9   :  { %301 = vst.msk [vmem:[%s1843_s10 + $0x40] sm:$0xff] %vm292_vm4, %v239_v28  ;;  %1214 = vmatpush3.bf16.msra.mxu1 %v1213_v26 }
  0xfa   :  { %v243_v30 = vpop.f32.mrb[18].mxu0 }
  0xfb   :  { %v244_v31 = vadd.f32 %v1527_v34, %v243_v30  ;;  %v1055_v32 = vpop.f32.mrb[19].mxu0 }
  0xfc   :  { %1145 = vmatmul.mubr.msk.f32.vlgmr.msra.gmra.mrb[22].mxu1 %vm292_vm4, %v1537_v40 }
  0xfd   :  { %302 = vst.msk [vmem:[%s1843_s10 + $0x48] sm:$0xff] %vm292_vm4, %v244_v31  ;;  %v1176_v33 = vpack.c.bf16 %v244_v31, %v239_v28  ;;  %1147 = vmatprep.mubr.msk.f32.mxu1 %vm1269_vm1, %v1268_v2 }
  0xfe   :  { %v248_v35 = vpop.f32.mrb[20].mxu0 }
  0xff   :  { %v249_v36 = vadd.f32 %v1527_v34, %v248_v35  ;;  %v1058_v37 = vpop.f32.mrb[21].mxu0  ;;  %1178 = vmatpush1.bf16.xpose.msk.msra.mxu0 %vm1549_vm5, %v1176_v33 }
 0x100   :  { %1148 = vmatmul.mubr.msk.f32.gmra.mrb[24].mxu1 %vm292_vm4, %v1559_v48  ;;  %1179 = vmatprep.subr.bf16.mxu0 %v1270_v6 }
 0x101   :  { %303 = vst.msk [vmem:[%s1843_s10 + $0x50] sm:$0xff] %vm292_vm4, %v249_v36  ;;  %1150 = vmatprep.mubr.msk.f32.mxu1 %vm1269_vm1, %v1268_v2 }
 0x102   :  { %v253_v38 = vpop.f32.mrb[22].mxu0 }
 0x103   :  { %v254_v39 = vadd.f32 %v1527_v34, %v253_v38  ;;  %v1061_v40 = vpop.f32.mrb[23].mxu0 }
 0x104   :  { %1151 = vmatmul.mubr.msk.f32.gmra.mrb[26].mxu1 %vm292_vm4, %v1582_v55 }
 0x105   :  { %304 = vst.msk [vmem:[%s1843_s10 + $0x58] sm:$0xff] %vm292_vm4, %v254_v39  ;;  %v1180_v41 = vpack.c.bf16 %v254_v39, %v249_v36  ;;  %1153 = vmatprep.mubr.msk.f32.mxu1 %vm1269_vm1, %v1268_v2 }
 0x106   :  { %v258_v42 = vpop.f32.mrb[24].mxu0 }
 0x107   :  { %v259_v43 = vadd.f32 %v1527_v34, %v258_v42  ;;  %v1064_v44 = vpop.f32.mrb[25].mxu0  ;;  %1182 = vmatpush1.bf16.xpose.msk.msra.mxu0 %vm1549_vm5, %v1180_v41 }
 0x108   :  { %1154 = vmatmul.mubr.msk.f32.gmra.mrb[28].mxu1 %vm292_vm4, %v1599_v62  ;;  %1183 = vmatprep.subr.bf16.mxu0 %v1270_v6 }
 0x109   :  { %305 = vst.msk [vmem:[%s1843_s10 + $0x60] sm:$0xff] %vm292_vm4, %v259_v43  ;;  %1156 = vmatprep.mubr.msk.f32.mxu1 %vm1269_vm1, %v1268_v2 }
 0x10a   :  { %v263_v45 = vpop.f32.mrb[26].mxu0 }
 0x10b   :  { %v264_v47 = vadd.f32 %v1527_v34, %v263_v45  ;;  %v1067_v48 = vpop.f32.mrb[27].mxu0 }
 0x10c   :  { %1157 = vmatmul.mubr.msk.f32.gmra.mrb[30].mxu1 %vm292_vm4, %v1622_v7 }
 0x10d   :  { %306 = vst.msk [vmem:[%s1843_s10 + $0x68] sm:$0xff] %vm292_vm4, %v264_v47  ;;  %v1184_v49 = vpack.c.bf16 %v264_v47, %v259_v43 }
 0x10e   :  { %v268_v50 = vpop.f32.mrb[28].mxu0 }
 0x10f   :  { %v269_v51 = vadd.f32 %v1527_v34, %v268_v50  ;;  %v1070_v52 = vpop.f32.mrb[29].mxu0  ;;  %1186 = vmatpush1.bf16.xpose.msk.msra.mxu0 %vm1549_vm5, %v1184_v49 }
 0x110   :  { %1187 = vmatprep.subr.bf16.mxu0 %v1270_v6 }
 0x111   :  { %307 = vst.msk [vmem:[%s1843_s10 + $0x70] sm:$0xff] %vm292_vm4, %v269_v51 }
 0x112   :  { %v273_v53 = vpop.f32.mrb[30].mxu0 }
 0x113   :  { %v274_v54 = vadd.f32 %v1527_v34, %v273_v53  ;;  %v1073_v55 = vpop.f32.mrb[31].mxu0 }
 0x115   :  { %308 = vst.msk [vmem:[%s1843_s10 + $0x78] sm:$0xff] %vm292_vm4, %v274_v54  ;;  %v1188_v56 = vpack.c.bf16 %v274_v54, %v269_v51 }
 0x116   :  { %v278_v57 = vpop.f32.mrb[32].mxu0 }
 0x117   :  { %v279_v58 = vadd.f32 %v1527_v34, %v278_v57  ;;  %v1076_v59 = vpop.f32.mrb[33].mxu0  ;;  %1190 = vmatpush1.bf16.xpose.msk.msra.mxu0 %vm1549_vm5, %v1188_v56 }
 0x118   :  { %1191 = vmatprep.subr.bf16.mxu0 %v1270_v6 }
 0x119   :  { %309 = vst.msk [vmem:[%s1843_s10 + $0x80] sm:$0xff] %vm292_vm4, %v279_v58 }
 0x11a   :  { %v283_v60 = vpop.f32.mrb[34].mxu0 }
 0x11b   :  { %v284_v61 = vadd.f32 %v1527_v34, %v283_v60  ;;  %v1079_v62 = vpop.f32.mrb[35].mxu0 }
 0x11d   :  { %310 = vst.msk [vmem:[%s1843_s10 + $0x88] sm:$0xff] %vm292_vm4, %v284_v61  ;;  %v1192_v63 = vpack.c.bf16 %v284_v61, %v279_v58 }
 0x11e   :  { %v288_v0 = vpop.f32.mrb[36].mxu0 }
 0x11f   :  { %1194 = vmatpush1.bf16.xpose.msk.msra.mxu0 %vm1549_vm5, %v1192_v63  ;;  %v289_v6 = vadd.f32 %v1527_v34, %v288_v0  ;;  %v1082_v1 = vpop.f32.mrb[37].mxu0 }
 0x120   :  { %538 = vmatprep.subr.mxu0 %v1268_v2 }
 0x121   :  { %312 = vst.msk [vmem:[%s1843_s10 + $0x90] sm:$0x3f] %vm311_vm6, %v289_v6 }
 0x127   :  { %956 = vmatpush1.xpose.msk.msra.mxu0 %vm292_vm4, %v289_v6 }
 0x12a   :  { %957 = vmatmul.mubr.msk.f32.vlgmr.msra.gmra.mrb[38].mxu0 %vm292_vm4, %v437_v3 }
 0x1ae   :  { %v654_v46 = vpop.f32.mrb[10].mxu1 }
 0x1af   :  { %687 = vst.msk [vmem:[%s1846_s13] sm:$0xff] %vm686_vm7, %v654_v46  ;;  %v1110_v2 = vpop.f32.mrb[11].mxu1 }
 0x1b2   :  { %v659_v34 = vpop.f32.mrb[12].mxu1 }
 0x1b3   :  { %688 = vst.msk [vmem:[%s1846_s13 + $0x8] sm:$0xff] %vm686_vm7, %v659_v34  ;;  %v1113_v4 = vpop.f32.mrb[13].mxu1 }
 0x1b6   :  { %v664_v5 = vpop.f32.mrb[14].mxu1 }
 0x1b7   :  { %689 = vst.msk [vmem:[%s1846_s13 + $0x10] sm:$0xff] %vm686_vm7, %v664_v5  ;;  %v1116_v7 = vpop.f32.mrb[15].mxu1 }
 0x1ba   :  { %v669_v8 = vpop.f32.mrb[16].mxu1 }
 0x1bb   :  { %690 = vst.msk [vmem:[%s1846_s13 + $0x18] sm:$0xff] %vm686_vm7, %v669_v8  ;;  %v1119_v9 = vpop.f32.mrb[17].mxu1 }
 0x1be   :  { %v674_v10 = vpop.f32.mrb[18].mxu1 }
 0x1bf   :  { %691 = vst.msk [vmem:[%s1846_s13 + $0x20] sm:$0xff] %vm686_vm7, %v674_v10  ;;  %v1122_v11 = vpop.f32.mrb[19].mxu1 }
 0x1c7   :  { %v766_v12 = vpop.f32.mrb[20].mxu1 }
 0x1c8   :  { %861 = vst.msk [vmem:[#allocation4] sm:$0xf] %vm860_vm8, %v766_v12  ;;  %v1135_v13 = vpop.f32.mrb[21].mxu1 }
 0x1c9   :  { %1231 = shalt.err (!%p1228_p4)
}
 0x1ca   :  { %s1232_s26 = scalar_lea.hbm %s1847_s14, 64 }
 0x1cb   :  { %p1233_p5 = scmp.ne.s32.totalorder %s1847_s14, %s1232_s26  ;;  %p1236_p6 = scmp.lt.u32.totalorder %s1232_s26, %s1847_s14 }
 0x1cd   :  { %p1238_p7 = pnand %p1236_p6, %p1233_p5 }
 0x1cf   :  { %1241 = shalt.err (!%p1238_p7)
}
 0x1d0   :  { %892 = dma.vmem_to_hbm [thread:$0]  %s890_s24, 64, %s1847_s14, [#allocation5]   ;;  %v836_v14 = vpop.f32.mrb[22].mxu1  ;;  %vm682_vm9 = vcmask 1043456   ;;  %vm683_vm10 = vcmask 179204  }
 0x1d1   :  { %862 = vst.msk [vmem:[%s1848_s15] sm:$0xff] %vm686_vm7, %v836_v14  ;;  %v1146_v15 = vpop.f32.mrb[23].mxu1  ;;  %s1272_s10 = smov [#allocation2]   ;;  %vm684_vm11 = vmor %vm683_vm10, %vm682_vm9 }
 0x1d2   :  { %s877_s6 = sshll.u32 %s1272_s10, 4  ;;  %s878_s6 = int_to_ptr.vmem [resolvable:$true] %s877_s6 }
 0x1d3   :  { %v841_v16 = vpop.f32.mrb[24].mxu1  ;;  %s1242_s20 = scalar_lea.vmem %s878_s6, 128  ;;  %p1247_p9 = scmp.lt.s32.totalorder %s878_s6, %s878_s6 }
 0x1d4   :  { %863 = vst.msk [vmem:[%s1848_s15 + $0x8] sm:$0xff] %vm686_vm7, %v841_v16  ;;  %v1149_v17 = vpop.f32.mrb[25].mxu1  ;;  %p1243_p8 = scmp.ne.s32.totalorder %s878_s6, %s1242_s20  ;;  %p1248_p10 = scmp.lt.s32.totalorder %s1242_s20, %s1242_s20 }
 0x1d6   :  { %p1249_p11 = por %p1248_p10, %p1247_p9 }
 0x1d7   :  { %v846_v18 = vpop.f32.mrb[26].mxu1 }
 0x1d8   :  { %864 = vst.msk [vmem:[%s1848_s15 + $0x10] sm:$0xff] %vm686_vm7, %v846_v18  ;;  %v1152_v19 = vpop.f32.mrb[27].mxu1  ;;  %p1250_p12 = pnand %p1249_p11, %p1243_p8 }
 0x1db   :  { %v851_v20 = vpop.f32.mrb[28].mxu1 }
 0x1dc   :  { %865 = vst.msk [vmem:[%s1848_s15 + $0x18] sm:$0xff] %vm686_vm7, %v851_v20  ;;  %v1155_v21 = vpop.f32.mrb[29].mxu1 }
 0x1df   :  { %v856_v22 = vpop.f32.mrb[30].mxu1 }
 0x1e0   :  { %866 = vst.msk [vmem:[%s1848_s15 + $0x20] sm:$0xff] %vm686_vm7, %v856_v22  ;;  %v1158_v23 = vpop.f32.mrb[31].mxu1 }
 0x1fd   :  { %v568_v24 = vpop.f32.mrb[38].mxu0 }
 0x1fe   :  { %v570_v25 = vpop.f32.mrb[39].mxu0 }
 0x1ff   :  { %v680_v26 = vcombine.low %v568_v24, %v570_v25 }
 0x201   :  { %685 = vst.msk [vmem:[#allocation2] sm:$0xff] %vm684_vm11, %v680_v26 }
 0x202   :  { %1253 = shalt.err (!%p1250_p12)
}
 0x203   :  { %s1254_s22 = scalar_lea.hbm %s1845_s12, 128 }
 0x204   :  { %p1255_p13 = scmp.ne.s32.totalorder %s1845_s12, %s1254_s22  ;;  %p1258_p0 = scmp.lt.u32.totalorder %s1254_s22, %s1845_s12 }
 0x206   :  { %p1260_p1 = pnand %p1258_p0, %p1255_p13 }
 0x208   :  { %1263 = shalt.err (!%p1260_p1)
}
 0x209   :  { %880 = dma.vmem_to_hbm [thread:$0]  %s878_s6, 128, %s1845_s12, [#allocation3]  }
 0x20a   :  { %1264 = dma.done.wait [#allocation3], 128  }
 0x20b   :  { %1265 = vsyncadd [#allocation3], 4294967168 }
 0x20c   :  { %1266 = dma.done.wait [#allocation5], 64  }
 0x20d   :  { %1267 = vsyncadd [#allocation5], 4294967232 }
 0x20e   :  { %909 = vsyncpa [#allocation3], 1 }
 0x20f   :  { %910 = vsyncpa [#allocation5], 1 }

</bundles_post_ra>
